<compile_context>
chip_gen: v7x
topology: tpu7x:2x2x1
jax: 0.10.0
libtpu: 0.0.40
codegen_flags: <defaults>
</compile_context>

<pallas_src>
import functools

import numpy as np

import jax
import jax.numpy as jnp
from jax import lax
from jax.experimental import pallas as pl
from jax.experimental.pallas import tpu as pltpu


def _static_pow(d, power):
    """d ** power with `power` a static Python number (trace-time expansion)."""
    if float(power) == int(power) and int(power) >= 0:
        p = int(power)
        if p == 0:
            return jnp.ones_like(d)
        result = None
        base = d
        while p:
            if p & 1:
                result = base if result is None else result * base
            p >>= 1
            if p:
                base = base * base
        return result
    # Non-integer / negative powers: generic pow (matches torch semantics,
    # incl. NaN for negative base with fractional exponent).
    return jnp.power(d, jnp.float32(power))


def _enhanced_mse_kernel(x_ref, y_ref, o_ref, acc_ref, *, scale, power, n,
                         tile_rows, lanes, ragged, fold_scale, final_const):
    i = pl.program_id(0)

    @pl.when(i == 0)
    def _init():
        acc_ref[...] = jnp.zeros_like(acc_ref)

    d = x_ref[...].astype(jnp.float32) - y_ref[...].astype(jnp.float32)
    if not fold_scale:
        d = d * jnp.float32(scale)
    p = _static_pow(d, power)

    def _accumulate(vals):
        # (tile_rows, 128) -> (tile_rows//8, 8, 128): pure vreg adds into the
        # (8, 128) accumulator; the cross-sublane/lane reduce is deferred to
        # the finalize step.
        acc_ref[...] += jnp.sum(vals.reshape(tile_rows // 8, 8, lanes), axis=0)

    last = pl.num_programs(0) - 1
    if ragged:
        @pl.when(i != last)
        def _body():
            _accumulate(p)

        @pl.when(i == last)
        def _tail():
            row_ids = lax.broadcasted_iota(jnp.int32, (tile_rows, lanes), 0)
            lane_ids = lax.broadcasted_iota(jnp.int32, (tile_rows, lanes), 1)
            idx = (i * tile_rows + row_ids) * lanes + lane_ids
            # Mask AFTER the pow: out-of-bounds block contents are unspecified
            # (possibly NaN); select does not propagate the unselected branch.
            _accumulate(jnp.where(idx < n, p, jnp.float32(0.0)))
    else:
        _accumulate(p)

    @pl.when(i == last)
    def _finalize():
        o_ref[0, 0] = jnp.sum(acc_ref[...]) * jnp.float32(final_const)


def enhanced_mse_loss(inp, target, power=4, scale=10.0, *, max_tile_rows=4096):
    assert inp.shape == target.shape, (inp.shape, target.shape)
    n = int(np.prod(inp.shape))
    if n == 0:
        return jnp.float32(jnp.nan)  # torch.mean over an empty tensor -> nan

    lanes = 128
    itemsize = int(jnp.dtype(inp.dtype).itemsize)
    sublane = 8 * max(1, 4 // max(itemsize, 1))  # 8 f32 / 16 bf16 / 32 int8

    xf = jnp.ravel(inp)
    yf = jnp.ravel(target)

    rows = -(-n // lanes)
    lane_pad = rows * lanes - n
    if lane_pad:
        # Only when numel is not a multiple of 128 (pad of at most 127
        # elements so the array can be viewed as (rows, 128)); the padded
        # region is masked in-kernel, so semantics hold for any power.
        xf = jnp.pad(xf, (0, lane_pad))
        yf = jnp.pad(yf, (0, lane_pad))
    x2 = xf.reshape(rows, lanes)
    y2 = yf.reshape(rows, lanes)

    max_tile_rows = -(-int(max_tile_rows) // sublane) * sublane
    if rows <= max_tile_rows:
        tile_rows = -(-rows // sublane) * sublane
    else:
        tile_rows = max_tile_rows
    grid = -(-rows // tile_rows)
    # True iff the last block has any out-of-bounds tail (row raggedness
    # and/or lane padding) -> enable the in-kernel mask on the last step only.
    ragged = (grid * tile_rows * lanes != n)

    fold_scale = float(power) == int(power)  # (x*s)**p == x**p * s**p exactly
    if fold_scale:
        final_const = (float(scale) ** int(power)) / float(n)
    else:
        final_const = 1.0 / float(n)

    kernel = functools.partial(
        _enhanced_mse_kernel,
        scale=float(scale), power=power, n=n, tile_rows=tile_rows,
        lanes=lanes, ragged=ragged, fold_scale=fold_scale,
        final_const=final_const)

    out = pl.pallas_call(
        kernel,
        out_shape=jax.ShapeDtypeStruct((1, 1), jnp.float32),
        grid_spec=pltpu.PrefetchScalarGridSpec(
            num_scalar_prefetch=0,
            grid=(grid,),
            in_specs=[pl.BlockSpec((tile_rows, lanes), lambda i: (i, 0)),
                      pl.BlockSpec((tile_rows, lanes), lambda i: (i, 0))],
            out_specs=pl.BlockSpec(memory_space=pltpu.MemorySpace.SMEM),
            scratch_shapes=[pltpu.VMEM((8, lanes), jnp.float32)],
        ),
        compiler_params=pltpu.CompilerParams(
            dimension_semantics=("arbitrary",),   # streaming reduction axis
            vmem_limit_bytes=32 * 1024 * 1024,
        ),
    )(x2, y2)
    return out[0, 0]


def _ref_loss(x, y, power=4, scale=10.0):
    return jnp.mean(((x.astype(jnp.float32) - y.astype(jnp.float32))
                     * jnp.float32(scale)) ** power)


if __name__ == "__main__":
    key = jax.random.PRNGKey(0)
    k1, k2, k3, k4, k5, k6 = jax.random.split(key, 6)

    # 1) Aligned small NCHW shape (single tile, no masking path).
    x = jax.random.normal(k1, (2, 4, 16, 16), jnp.float32)
    y = jax.random.normal(k2, (2, 4, 16, 16), jnp.float32)
    out = jax.block_until_ready(enhanced_mse_loss(x, y, power=4, scale=10.0))
    np.testing.assert_allclose(np.asarray(out), np.asarray(_ref_loss(x, y)),
                               rtol=1e-4)

    # 2) Unaligned numel (15000): exercises the in-kernel ragged mask on a
    #    multi-step grid (max_tile_rows shrunk to force several tiles).
    x = jax.random.normal(k3, (2, 3, 50, 50), jnp.float32)
    y = jax.random.normal(k4, (2, 3, 50, 50), jnp.float32)
    out = jax.block_until_ready(
        enhanced_mse_loss(x, y, power=4, scale=10.0, max_tile_rows=32))
    np.testing.assert_allclose(np.asarray(out), np.asarray(_ref_loss(x, y)),
                               rtol=1e-4)

    # 3) Aligned multi-tile streaming path (grid > 1, no masking).
    x = jax.random.normal(k5, (2, 4, 64, 64), jnp.float32)
    y = jax.random.normal(k6, (2, 4, 64, 64), jnp.float32)
    out = jax.block_until_ready(
        enhanced_mse_loss(x, y, power=4, scale=10.0, max_tile_rows=64))
    np.testing.assert_allclose(np.asarray(out), np.asarray(_ref_loss(x, y)),
                               rtol=1e-4)

    print("KERNEL_OK")
</pallas_src>

<mosaic_0001>
module attributes {stable_mosaic.version = 11 : i64} {
  func.func @_enhanced_mse_kernel(%arg0: i32, %arg1: memref<16x128xf32, #tpu.memory_space<vmem>>, %arg2: memref<16x128xf32, #tpu.memory_space<vmem>>, %arg3: memref<1x1xf32, #tpu.memory_space<smem>>, %arg4: memref<8x128xf32, #tpu.memory_space<vmem>>) attributes {dimension_semantics = [#tpu.dimension_semantics<arbitrary>], iteration_bounds = array<i64: 1>, scalar_prefetch = 0 : i64, scratch_operands = 1 : i64, tpu.core_type = #tpu.core_type<tc>, window_params = [{transform_indices = @transform_0, window_bounds = array<i64: 16, 128>}, {transform_indices = @transform_1, window_bounds = array<i64: 16, 128>}, {transform_indices = @transform_2, window_bounds = array<i64: 1, 1>}]} {
    %c0_i32 = arith.constant 0 : i32
    %0 = arith.cmpi eq, %arg0, %c0_i32 : i32
    %1 = arith.extui %0 : i1 to i32
    %c0_i32_0 = arith.constant 0 : i32
    %2 = arith.cmpi ne, %1, %c0_i32_0 : i32
    scf.if %2 {
      %cst_10 = arith.constant 0.000000e+00 : f32
      %16 = vector.broadcast %cst_10 : f32 to vector<8x128xf32>
      %c0_11 = arith.constant 0 : index
      %c0_12 = arith.constant 0 : index
      %17 = vector.load %arg4[%c0_11, %c0_12] : memref<8x128xf32, #tpu.memory_space<vmem>>, vector<8x128xf32>
      tpu.vector_store %arg4[%c0_11, %c0_12], %16 {strides = array<i32>} : memref<8x128xf32, #tpu.memory_space<vmem>>, vector<8x128xf32>,
    } else {
    }
    %c0 = arith.constant 0 : index
    %c0_1 = arith.constant 0 : index
    %3 = vector.load %arg1[%c0, %c0_1] : memref<16x128xf32, #tpu.memory_space<vmem>>, vector<16x128xf32>
    %c0_2 = arith.constant 0 : index
    %c0_3 = arith.constant 0 : index
    %4 = vector.load %arg2[%c0_2, %c0_3] : memref<16x128xf32, #tpu.memory_space<vmem>>, vector<16x128xf32>
    %5 = arith.subf %3, %4 : vector<16x128xf32>
    %6 = arith.mulf %5, %5 : vector<16x128xf32>
    %7 = arith.mulf %6, %6 : vector<16x128xf32>
    %c0_4 = arith.constant 0 : index
    %c0_5 = arith.constant 0 : index
    %8 = vector.load %arg4[%c0_4, %c0_5] : memref<8x128xf32, #tpu.memory_space<vmem>>, vector<8x128xf32>
    %9 = vector.shape_cast %7 : vector<16x128xf32> to vector<2x8x128xf32>
    %cst = arith.constant dense<0.000000e+00> : vector<8x128xf32>
    %10 = vector.multi_reduction <add>, %9, %cst [0] : vector<2x8x128xf32> to vector<8x128xf32>
    %11 = arith.addf %8, %10 : vector<8x128xf32>
    %c0_6 = arith.constant 0 : index
    %c0_7 = arith.constant 0 : index
    %12 = vector.load %arg4[%c0_6, %c0_7] : memref<8x128xf32, #tpu.memory_space<vmem>>, vector<8x128xf32>
    tpu.vector_store %arg4[%c0_6, %c0_7], %11 {strides = array<i32>} : memref<8x128xf32, #tpu.memory_space<vmem>>, vector<8x128xf32>,
    %c0_i32_8 = arith.constant 0 : i32
    %13 = arith.cmpi eq, %arg0, %c0_i32_8 : i32
    %14 = arith.extui %13 : i1 to i32
    %c0_i32_9 = arith.constant 0 : i32
    %15 = arith.cmpi ne, %14, %c0_i32_9 : i32
    scf.if %15 {
      %c0_10 = arith.constant 0 : index
      %c0_11 = arith.constant 0 : index
      %16 = vector.load %arg4[%c0_10, %c0_11] : memref<8x128xf32, #tpu.memory_space<vmem>>, vector<8x128xf32>
      %17 = vector.shape_cast %16 : vector<8x128xf32> to vector<1x8x128xf32>
      %cst_12 = arith.constant dense<0.000000e+00> : vector<1xf32>
      %18 = vector.multi_reduction <add>, %17, %cst_12 [1, 2] : vector<1x8x128xf32> to vector<1xf32>
      %19 = vector.shape_cast %18 : vector<1xf32> to vector<1x1x1xf32>
      %20 = vector.extract %19[0, 0, 0] : f32 from vector<1x1x1xf32>
      %cst_13 = arith.constant 4.8828125 : f32
      %21 = arith.mulf %20, %cst_13 : f32
      %c0_14 = arith.constant 0 : index
      %c0_15 = arith.constant 0 : index
      %22 = memref.load %arg3[%c0_14, %c0_15] : memref<1x1xf32, #tpu.memory_space<smem>>
      memref.store %21, %arg3[%c0_14, %c0_15] : memref<1x1xf32, #tpu.memory_space<smem>>
    } else {
    }
    return
  }
  func.func @transform_0(%arg0: i32) -> (i32, i32) {
    %c0_i32 = arith.constant 0 : i32
    %c0_i32_0 = arith.constant 0 : i32
    return %arg0, %c0_i32 : i32, i32
  }
  func.func @transform_1(%arg0: i32) -> (i32, i32) {
    %c0_i32 = arith.constant 0 : i32
    %c0_i32_0 = arith.constant 0 : i32
    return %arg0, %c0_i32 : i32, i32
  }
  func.func @transform_2(%arg0: i32) -> (i32, i32) {
    %c0_i32 = arith.constant 0 : i32
    %c0_i32_0 = arith.constant 0 : i32
    %c0_i32_1 = arith.constant 0 : i32
    return %c0_i32, %c0_i32_0 : i32, i32
  }
}

</mosaic_0001>

<bundles_post_ra>
// kernel: tpu_custom_call.1
= control target key start
LH: loop header
LB: loop body
LE: loop exit
PB: predicated region body
PF: predicated region fallthrough
CT: control target
= control target key end

     0   :  { %7 = vsyncpa [#allocation4], 0  ;;  %s213_s0 = inlined_call_operand.hbm [shape: f32[16,128], index: 0, kind: input, shape index: {}]   ;;  %s214_s1 = inlined_call_operand.hbm [shape: f32[16,128], index: 1, kind: input, shape index: {}]   ;;  %s215_s2 = inlined_call_operand.hbm [shape: f32[1,1], index: 2, kind: output, shape index: {}]  }
   0x1   :  { %8 = vsyncpa [#allocation7], 0 }
   0x2   :  { %9 = vsyncpa [#allocation5], 0  ;;  %s157_s9 = smov [#allocation3]   ;;  %s97_s13 = scalar_lea.hbm %s213_s0, 256 }
   0x3   :  { %s15_s10 = sshll.u32 %s157_s9, 4  ;;  %p98_p0 = scmp.ne.s32.totalorder %s213_s0, %s97_s13  ;;  %s16_s10 = int_to_ptr.vmem [resolvable:$true] %s15_s10 }
   0x4   :  { %p101_p1 = scmp.lt.u32.totalorder %s97_s13, %s213_s0 }
   0x6   :  { %p103_p2 = pnand %p101_p1, %p98_p0 }
   0x8   :  { %106 = shalt.err (!%p103_p2)
}
   0x9   :  { %s107_s18 = scalar_lea.vmem %s16_s10, 256  ;;  %p112_p4 = scmp.lt.s32.totalorder %s16_s10, %s16_s10 }
   0xa   :  { %p108_p3 = scmp.ne.s32.totalorder %s16_s10, %s107_s18  ;;  %p113_p5 = scmp.lt.s32.totalorder %s107_s18, %s107_s18 }
   0xc   :  { %p114_p6 = por %p113_p5, %p112_p4 }
   0xe   :  { %p115_p7 = pnand %p114_p6, %p108_p3 }
  0x10   :  { %118 = shalt.err (!%p115_p7)
}
  0x11   :  { %s158_s19 = smov 128   ;;  %s159_s20 = smov 8  }
  0x12   :  { %21 = dma.hbm_to_vmem [thread:$0]  %s213_s0, 256, %s16_s10, [#allocation4], %s158_s19, %s158_s19, %s159_s20  }
  0x13   :  { %s160_s23 = smov [#allocation6]   ;;  %s119_s27 = scalar_lea.hbm %s214_s1, 256 }
  0x14   :  { %s27_s24 = sshll.u32 %s160_s23, 4  ;;  %p120_p8 = scmp.ne.s32.totalorder %s214_s1, %s119_s27  ;;  %s28_s24 = int_to_ptr.vmem [resolvable:$true] %s27_s24 }
  0x15   :  { %p123_p9 = scmp.lt.u32.totalorder %s119_s27, %s214_s1 }
  0x17   :  { %p125_p10 = pnand %p123_p9, %p120_p8 }
  0x19   :  { %128 = shalt.err (!%p125_p10)
}
  0x1a   :  { %s129_s4 = scalar_lea.vmem %s28_s24, 256  ;;  %p134_p12 = scmp.lt.s32.totalorder %s28_s24, %s28_s24 }
  0x1b   :  { %p130_p11 = scmp.ne.s32.totalorder %s28_s24, %s129_s4  ;;  %p135_p13 = scmp.lt.s32.totalorder %s129_s4, %s129_s4 }
  0x1d   :  { %p136_p0 = por %p135_p13, %p134_p12 }
  0x1f   :  { %p137_p1 = pnand %p136_p0, %p130_p11 }
  0x21   :  { %140 = shalt.err (!%p137_p1)
}
  0x22   :  { %33 = dma.hbm_to_vmem [thread:$0]  %s214_s1, 256, %s28_s24, [#allocation7], %s158_s19, %s158_s19, %s159_s20  }
  0x23   :  { %151 = dma.done.wait [#allocation4], 256  }
  0x24   :  { %152 = vsyncadd [#allocation4], 4294967040 }
  0x25   :  { %153 = dma.done.wait [#allocation7], 256  }
  0x26   :  { %154 = vsyncadd [#allocation7], 4294967040  ;;  %v45_v0 = vld [vmem:[#allocation3] sm:$0xff]  ;;  %v46_v1 = vld [vmem:[#allocation3 + $0x8] sm:$0xff]  ;;  %s141_s9 = scalar_lea.hbm %s215_s2, 16 }
  0x27   :  { %v47_v2 = vld [vmem:[#allocation6] sm:$0xff]  ;;  %v48_v3 = vld [vmem:[#allocation6 + $0x8] sm:$0xff]  ;;  %p142_p2 = scmp.ne.s32.totalorder %s215_s2, %s141_s9  ;;  %p145_p3 = scmp.lt.u32.totalorder %s141_s9, %s215_s2 }
  0x28   :  { %v49_v4 = vsub.f32 %v45_v0, %v47_v2  ;;  %v50_v5 = vsub.f32 %v46_v1, %v48_v3 }
  0x29   :  { %p147_p4 = pnand %p145_p3, %p142_p2 }
  0x2a   :  { %v51_v6 = vmul.f32 %v49_v4, %v49_v4  ;;  %v52_v7 = vmul.f32 %v50_v5, %v50_v5 }
  0x2c   :  { %v53_v8 = vmul.f32 %v51_v6, %v51_v6  ;;  %v54_v9 = vmul.f32 %v52_v7, %v52_v7 }
  0x2e   :  { %v56_v10 = vadd.f32 %v54_v9, %v53_v8 }
  0x30   :  { %63 = vadd.xlane.f32.xlu0 %v56_v10 }
  0xbd   :  { %v64_v11 = vpop.xlane.xlu0 %63 }
  0xbe   :  { %v65_v12 = vrot.slane %v64_v11, 4 }
  0xc0   :  { %v66_v13 = vadd.f32 %v65_v12, %v64_v11 }
  0xc2   :  { %v67_v14 = vrot.slane %v66_v13, 2 }
  0xc4   :  { %v68_v15 = vadd.f32 %v67_v14, %v66_v13 }
  0xc6   :  { %v69_v16 = vrot.slane %v68_v15, 1 }
  0xc8   :  { %v70_v17 = vadd.f32 %v69_v16, %v68_v15 }
  0xca   :  { %90 = vpush %v70_v17 }
  0xfb   :  { %s91_s1 = spop %90 }
  0xfc   :  { %s72_s6 = smul.f32 4.8828125, %s91_s1 }
  0xfe   :  { %74 = sst [smem:[#allocation8]] %s72_s6 }
  0xff   :  { %150 = shalt.err (!%p147_p4)
}
 0x100   :  { %s161_s14 = smov [#allocation8]  }
 0x101   :  { %82 = dma.smem_to_hbm %s161_s14, 16, %s215_s2, [#allocation5]  }
 0x102   :  { %155 = dma.done.wait [#allocation5], 16  }
 0x103   :  { %156 = vsyncadd [#allocation5], 4294967280 }
 0x104   :  { %86 = sfence }
 0x105   :  { %87 = vsyncpa [#allocation4], 1 }
 0x106   :  { %88 = vsyncpa [#allocation7], 1 }
 0x107   :  { %89 = vsyncpa [#allocation5], 1 }

</bundles_post_ra>
